<compile_context>
chip_gen: v7x
topology: tpu7x:2x2x1
jax: 0.10.0
libtpu: 0.0.40
codegen_flags: <defaults>
</compile_context>

<pallas_src>
import jax
import jax.numpy as jnp
from jax import lax
from jax.experimental import pallas as pl
from jax.experimental.pallas import tpu as pltpu


_LANE = 128
# Tile-sizing budget: safe inside v5e's 16 MiB scoped default is too tight for the
# biggest tiles we want, so we budget 28 MiB and raise the scoped limit explicitly.
_VMEM_BUDGET_BYTES = 28 * 1024 * 1024
# Raised scoped-VMEM limit: well under v7x's 64 MiB physical (v5e/v6e have 128 MiB).
_VMEM_LIMIT_BYTES = 40 * 1024 * 1024


def _round_up(x, m):
    return ((x + m - 1) // m) * m


def _mlp_critic_kernel(x_ref, w1_ref, b1_ref, w2_ref, b2_ref, w3_ref, b3_ref, o_ref):
    # Layer 1: Linear + Tanh (MXU matmul, f32 accumulation; bias+tanh in f32:
    # safe on v5e which has no bf16 VPU/EUP, and keeps the f32 check tight).
    x = x_ref[...].astype(w1_ref.dtype)          # no-op when obs already matches W dtype
    h = jnp.dot(x, w1_ref[...], preferred_element_type=jnp.float32)
    h = jnp.tanh(h + b1_ref[...])

    # Layer 2: Linear + Tanh
    h = jnp.dot(h.astype(w2_ref.dtype), w2_ref[...], preferred_element_type=jnp.float32)
    h = jnp.tanh(h + b2_ref[...])

    # Output layer: Linear(h2 -> 1), computed as (1, h2) contracted against
    # (TM, h2) on the feature axis -> (1, TM): lane-dense row result, so the
    # store and HBM writeback are dense instead of masked / 128x-strided.
    v = lax.dot_general(
        w3_ref[...], h.astype(w3_ref.dtype),
        dimension_numbers=(((1,), (1,)), ((), ())),
        preferred_element_type=jnp.float32,
    )
    o_ref[...] = (v + b3_ref[0, 0]).astype(o_ref.dtype)


def _bytes_per_row(obs_dim, h1, h2, obs_itemsize):
    """Approximate VMEM bytes per batch row (lane-padded, pipelined buffers)."""
    obs = 2 * _round_up(max(obs_dim, 1), _LANE) * obs_itemsize      # double-buffered obs
    out = 2 * 8 * 4                                                 # (1, TM) f32 out row
    inter = 2 * (_round_up(max(h1, 1), _LANE)
                 + _round_up(max(h2, 1), _LANE)) * 4                # f32 intermediates, 2x slack
    return obs + out + inter


def mlp_critic_forward(obs, params, *, block_m=4096):
    """Fused MLP critic forward. obs: (B, obs_dim) -> returns (B,) float32."""
    w1, b1, w2, b2, w3, b3 = params
    B, obs_dim = obs.shape
    h1 = w1.shape[1]
    h2 = w2.shape[1]

    if B == 0:  # empty batch guard
        return jnp.zeros((0,), jnp.float32)

    # Final-layer weight as a (1, h2) row (for the lane-dense output matmul),
    # final-layer bias as a (1, 1) SMEM scalar.
    w3_row = w3.reshape(1, h2)
    b3_s = b3.reshape(1, 1).astype(jnp.float32)

    # --- Tile selection -----------------------------------------------------
    # (a) fit the VMEM budget, (b) cap at block_m, (c) cap at ~ceil(B/2) rounded
    # to 128 so large batches always give >= 2 grid steps (v7x megacore).
    per_row = _bytes_per_row(obs_dim, h1, h2, jnp.dtype(obs.dtype).itemsize)
    tm_vmem = max((_VMEM_BUDGET_BYTES // per_row) // _LANE * _LANE, _LANE)
    tm_half_batch = _round_up(max((B + 1) // 2, 1), _LANE)
    TM = max(_LANE, min(block_m, tm_vmem, tm_half_batch))

    # No wrapper-side pad of obs: grid covers B with a partial tail tile; the
    # garbage rows Pallas exposes there are row-independent and sliced off below.
    grid_steps = pl.cdiv(B, TM)
    B_pad = grid_steps * TM          # output allocation only (dense, unmasked stores)

    # Weights/biases: constant block index -> DMA'd once, resident across grid steps.
    resident = lambda shape: pl.BlockSpec(shape, lambda i: (0, 0))

    out = pl.pallas_call(
        _mlp_critic_kernel,
        out_shape=jax.ShapeDtypeStruct((1, B_pad), jnp.float32),
        grid=(grid_steps,),
        in_specs=[
            pl.BlockSpec((TM, obs_dim), lambda i: (i, 0)),        # obs: streamed per tile
            resident((obs_dim, h1)),                              # W1
            resident((1, h1)),                                    # b1
            resident((h1, h2)),                                   # W2
            resident((1, h2)),                                    # b2
            resident((1, h2)),                                    # W3 as a (1, h2) row
            pl.BlockSpec(memory_space=pltpu.MemorySpace.SMEM),    # b3 scalar in SMEM
        ],
        out_specs=pl.BlockSpec((1, TM), lambda i: (0, i)),        # lane-dense output row
        compiler_params=pltpu.CompilerParams(
            dimension_semantics=("parallel",),                    # megacore split on v7x
            vmem_limit_bytes=_VMEM_LIMIT_BYTES,
        ),
    )(obs, w1, b1, w2, b2, w3_row, b3_s)

    # (1, B_pad) -> (B,)  (drop tile padding; matches torch.squeeze(v, -1))
    return out[0, :B]


def init_params(key, obs_dim, hidden_sizes, dtype=jnp.float32):
    """Deterministic synthetic init matching nn.Linear shapes (stored transposed).

    Weights may be stored in bf16 on ALL generations (v5e/v6e/v7x MXUs are
    bf16-native); the kernel keeps bias-add/tanh and matmul accumulation in f32.
    Biases always stay f32.
    """
    sizes = [obs_dim] + list(hidden_sizes) + [1]
    params = []
    for j in range(len(sizes) - 1):
        key, kw, kb = jax.random.split(key, 3)
        fan_in = sizes[j]
        bound = 1.0 / jnp.sqrt(fan_in)
        w = jax.random.uniform(kw, (sizes[j], sizes[j + 1]), jnp.float32, -bound, bound)
        b = jax.random.uniform(kb, (1, sizes[j + 1]), jnp.float32, -bound, bound)
        params += [w.astype(dtype), b]  # biases stay f32
    return tuple(params)


def reference_forward(obs, params):
    w1, b1, w2, b2, w3, b3 = params
    h = jnp.tanh(obs @ w1.astype(jnp.float32) + b1)
    h = jnp.tanh(h @ w2.astype(jnp.float32) + b2)
    v = h @ w3.astype(jnp.float32) + b3
    return jnp.squeeze(v, axis=-1)


if __name__ == "__main__":
    key = jax.random.PRNGKey(0)
    obs_dim, hidden_sizes = 16, (32, 32)

    k_obs1, k_obs2, k_params = jax.random.split(key, 3)
    params = init_params(k_params, obs_dim, hidden_sizes)  # f32 params -> tight check

    fwd = jax.jit(mlp_critic_forward)

    # Case 1: tiny batch (single partial tile, B < TM).
    obs_small = jax.random.normal(k_obs1, (8, obs_dim), dtype=jnp.float32)
    v_small = jax.block_until_ready(fwd(obs_small, params))
    v_small_ref = reference_forward(obs_small, params)
    assert v_small.shape == (8,), v_small.shape
    assert jnp.allclose(v_small, v_small_ref, atol=1e-5, rtol=1e-5), (v_small, v_small_ref)

    # Case 2: batch not a multiple of the tile -> multi-step grid + masked tail read.
    obs_big = jax.random.normal(k_obs2, (200, obs_dim), dtype=jnp.float32)
    v_big = jax.block_until_ready(fwd(obs_big, params))
    v_big_ref = reference_forward(obs_big, params)
    assert v_big.shape == (200,), v_big.shape
    assert jnp.allclose(v_big, v_big_ref, atol=1e-5, rtol=1e-5), (v_big, v_big_ref)

    print("KERNEL_OK")
</pallas_src>

<mosaic_0001>
module attributes {stable_mosaic.version = 11 : i64} {
  func.func @_mlp_critic_kernel(%arg0: i32, %arg1: memref<128x16xf32, #tpu.memory_space<vmem>>, %arg2: memref<16x32xf32, #tpu.memory_space<vmem>>, %arg3: memref<1x32xf32, #tpu.memory_space<vmem>>, %arg4: memref<32x32xf32, #tpu.memory_space<vmem>>, %arg5: memref<1x32xf32, #tpu.memory_space<vmem>>, %arg6: memref<1x32xf32, #tpu.memory_space<vmem>>, %arg7: memref<1x1xf32, #tpu.memory_space<smem>>, %arg8: memref<1x128xf32, #tpu.memory_space<vmem>>) attributes {dimension_semantics = [#tpu.dimension_semantics<parallel>], iteration_bounds = array<i64: 1>, scalar_prefetch = 0 : i64, scratch_operands = 0 : i64, tpu.core_type = #tpu.core_type<tc>, window_params = [{transform_indices = @transform_0, window_bounds = array<i64: 128, 16>}, {pipeline_mode = #tpu.pipeline_mode<synchronous>, transform_indices = @transform_1, window_bounds = array<i64: 16, 32>}, {pipeline_mode = #tpu.pipeline_mode<synchronous>, transform_indices = @transform_2, window_bounds = array<i64: 1, 32>}, {pipeline_mode = #tpu.pipeline_mode<synchronous>, transform_indices = @transform_3, window_bounds = array<i64: 32, 32>}, {pipeline_mode = #tpu.pipeline_mode<synchronous>, transform_indices = @transform_4, window_bounds = array<i64: 1, 32>}, {pipeline_mode = #tpu.pipeline_mode<synchronous>, transform_indices = @transform_5, window_bounds = array<i64: 1, 32>}, {transform_indices = @transform_6, window_bounds = array<i64: 1, 1>}, {transform_indices = @transform_7, window_bounds = array<i64: 1, 128>}]} {
    %c0 = arith.constant 0 : index
    %c0_0 = arith.constant 0 : index
    %0 = vector.load %arg1[%c0, %c0_0] : memref<128x16xf32, #tpu.memory_space<vmem>>, vector<128x16xf32>
    %c0_1 = arith.constant 0 : index
    %c0_2 = arith.constant 0 : index
    %1 = vector.load %arg2[%c0_1, %c0_2] : memref<16x32xf32, #tpu.memory_space<vmem>>, vector<16x32xf32>
    %cst = arith.constant dense<0.000000e+00> : vector<128x32xf32>
    %2 = tpu.matmul %0, %1, %cst {dimension_numbers = #tpu.dot_dimension_numbers<[1], [0], [0], [1], [0, 0, 1, 1], [], []>} : vector<128x16xf32>, vector<16x32xf32>, vector<128x32xf32> -> vector<128x32xf32>
    %c0_3 = arith.constant 0 : index
    %c0_4 = arith.constant 0 : index
    %3 = vector.load %arg3[%c0_3, %c0_4] : memref<1x32xf32, #tpu.memory_space<vmem>>, vector<1x32xf32>
    %4 = vector.broadcast %3 : vector<1x32xf32> to vector<128x32xf32>
    %5 = arith.addf %2, %4 : vector<128x32xf32>
    %6 = math.tanh %5 : vector<128x32xf32>
    %c0_5 = arith.constant 0 : index
    %c0_6 = arith.constant 0 : index
    %7 = vector.load %arg4[%c0_5, %c0_6] : memref<32x32xf32, #tpu.memory_space<vmem>>, vector<32x32xf32>
    %cst_7 = arith.constant dense<0.000000e+00> : vector<128x32xf32>
    %8 = tpu.matmul %6, %7, %cst_7 {dimension_numbers = #tpu.dot_dimension_numbers<[1], [0], [0], [1], [0, 0, 1, 1], [], []>} : vector<128x32xf32>, vector<32x32xf32>, vector<128x32xf32> -> vector<128x32xf32>
    %c0_8 = arith.constant 0 : index
    %c0_9 = arith.constant 0 : index
    %9 = vector.load %arg5[%c0_8, %c0_9] : memref<1x32xf32, #tpu.memory_space<vmem>>, vector<1x32xf32>
    %10 = vector.broadcast %9 : vector<1x32xf32> to vector<128x32xf32>
    %11 = arith.addf %8, %10 : vector<128x32xf32>
    %12 = math.tanh %11 : vector<128x32xf32>
    %c0_10 = arith.constant 0 : index
    %c0_11 = arith.constant 0 : index
    %13 = vector.load %arg6[%c0_10, %c0_11] : memref<1x32xf32, #tpu.memory_space<vmem>>, vector<1x32xf32>
    %cst_12 = arith.constant dense<0.000000e+00> : vector<1x128xf32>
    %14 = tpu.matmul %13, %12, %cst_12 {dimension_numbers = #tpu.dot_dimension_numbers<[1], [1], [0], [0], [0, 0, 1, 0], [], []>} : vector<1x32xf32>, vector<128x32xf32>, vector<1x128xf32> -> vector<1x128xf32>
    %c0_13 = arith.constant 0 : index
    %c0_14 = arith.constant 0 : index
    %15 = memref.load %arg7[%c0_13, %c0_14] : memref<1x1xf32, #tpu.memory_space<smem>>
    %16 = vector.broadcast %15 : f32 to vector<1x128xf32>
    %17 = arith.addf %14, %16 : vector<1x128xf32>
    %c0_15 = arith.constant 0 : index
    %c0_16 = arith.constant 0 : index
    %18 = vector.load %arg8[%c0_15, %c0_16] : memref<1x128xf32, #tpu.memory_space<vmem>>, vector<1x128xf32>
    tpu.vector_store %arg8[%c0_15, %c0_16], %17 {strides = array<i32>} : memref<1x128xf32, #tpu.memory_space<vmem>>, vector<1x128xf32>,
    return
  }
  func.func @transform_0(%arg0: i32) -> (i32, i32) {
    %c0_i32 = arith.constant 0 : i32
    %c0_i32_0 = arith.constant 0 : i32
    return %arg0, %c0_i32 : i32, i32
  }
  func.func @transform_1(%arg0: i32) -> (i32, i32) {
    %c0_i32 = arith.constant 0 : i32
    %c0_i32_0 = arith.constant 0 : i32
    %c0_i32_1 = arith.constant 0 : i32
    return %c0_i32, %c0_i32_0 : i32, i32
  }
  func.func @transform_2(%arg0: i32) -> (i32, i32) {
    %c0_i32 = arith.constant 0 : i32
    %c0_i32_0 = arith.constant 0 : i32
    %c0_i32_1 = arith.constant 0 : i32
    return %c0_i32, %c0_i32_0 : i32, i32
  }
  func.func @transform_3(%arg0: i32) -> (i32, i32) {
    %c0_i32 = arith.constant 0 : i32
    %c0_i32_0 = arith.constant 0 : i32
    %c0_i32_1 = arith.constant 0 : i32
    return %c0_i32, %c0_i32_0 : i32, i32
  }
  func.func @transform_4(%arg0: i32) -> (i32, i32) {
    %c0_i32 = arith.constant 0 : i32
    %c0_i32_0 = arith.constant 0 : i32
    %c0_i32_1 = arith.constant 0 : i32
    return %c0_i32, %c0_i32_0 : i32, i32
  }
  func.func @transform_5(%arg0: i32) -> (i32, i32) {
    %c0_i32 = arith.constant 0 : i32
    %c0_i32_0 = arith.constant 0 : i32
    %c0_i32_1 = arith.constant 0 : i32
    return %c0_i32, %c0_i32_0 : i32, i32
  }
  func.func @transform_6(%arg0: i32) -> (i32, i32) {
    %c0_i32 = arith.constant 0 : i32
    %c0_i32_0 = arith.constant 0 : i32
    %c0_i32_1 = arith.constant 0 : i32
    return %c0_i32, %c0_i32_0 : i32, i32
  }
  func.func @transform_7(%arg0: i32) -> (i32, i32) {
    %c0_i32 = arith.constant 0 : i32
    %c0_i32_0 = arith.constant 0 : i32
    return %c0_i32, %arg0 : i32, i32
  }
}

</mosaic_0001>

<bundles_post_ra>
// kernel: mlp_critic_forward.1
= control target key start
LH: loop header
LB: loop body
LE: loop exit
PB: predicated region body
PF: predicated region fallthrough
CT: control target
= control target key end

     0   :  { %13 = vsyncpa [#allocation4], 0  ;;  %s1257_s0 = inlined_call_operand.hbm [shape: f32[8,16], index: 0, kind: input, shape index: {}]   ;;  %s1258_s1 = inlined_call_operand.hbm [shape: f32[16,32], index: 1, kind: input, shape index: {}]   ;;  %s1259_s2 = inlined_call_operand.vmem [shape: f32[1,32], index: 2, kind: input, shape index: {}]   ;;  %s1260_s3 = inlined_call_operand.hbm [shape: f32[32,32], index: 3, kind: input, shape index: {}]   ;;  %s1261_s4 = inlined_call_operand.vmem [shape: f32[1,32], index: 4, kind: input, shape index: {}]   ;;  %s1262_s5 = inlined_call_operand.vmem [shape: f32[1,32], index: 5, kind: input, shape index: {}]   ;;  %s1263_s6 = inlined_call_operand.<no memory space> [shape: f32[1,1], index: 6, kind: input, shape index: {}]   ;;  %s1264_s7 = inlined_call_operand.vmem [shape: f32[1,128], index: 7, kind: output, shape index: {}]  }
   0x1   :  { %14 = vsyncpa [#allocation6], 0 }
   0x2   :  { %19 = vsyncadd [#allocation4], 1920  ;;  %s1042_s24 = smov [#allocation5]   ;;  %s1043_s26 = smov [#allocation3]  }
   0x3   :  { %s32_s25 = sshll.u32 %s1042_s24, 4  ;;  %s20_s27 = sshll.u32 %s1043_s26, 4  ;;  %s33_s25 = int_to_ptr.vmem [resolvable:$true] %s32_s25  ;;  %s1090_s27 = int_to_ptr.vmem [resolvable:$true] %s20_s27 }
   0x4   :  { %s972_s30 = scalar_lea.hbm %s1258_s1, 256 }
   0x5   :  { %p973_p0 = scmp.ne.s32.totalorder %s1258_s1, %s972_s30  ;;  %p976_p1 = scmp.lt.u32.totalorder %s972_s30, %s1258_s1 }
   0x7   :  { %p978_p2 = pnand %p976_p1, %p973_p0 }
   0x9   :  { %981 = shalt.err (!%p978_p2)
}
   0xa   :  { %s982_s12 = scalar_lea.vmem %s33_s25, 256  ;;  %p987_p4 = scmp.lt.s32.totalorder %s33_s25, %s33_s25 }
   0xb   :  { %p983_p3 = scmp.ne.s32.totalorder %s33_s25, %s982_s12  ;;  %p988_p5 = scmp.lt.s32.totalorder %s982_s12, %s982_s12 }
   0xd   :  { %p989_p6 = por %p988_p5, %p987_p4 }
   0xf   :  { %p990_p7 = pnand %p989_p6, %p983_p3 }
  0x11   :  { %993 = shalt.err (!%p990_p7)
}
  0x12   :  { %s1044_s13 = smov 128   ;;  %s1045_s14 = smov 8  }
  0x13   :  { %38 = dma.hbm_to_vmem [thread:$0]  %s1258_s1, 256, %s33_s25, [#allocation6], %s1044_s13, %s1044_s13, %s1045_s14  }
  0x14   :  { %s994_s19 = scalar_lea.hbm %s1257_s0, 128 }
  0x15   :  { %p995_p8 = scmp.ne.s32.totalorder %s1257_s0, %s994_s19  ;;  %p998_p9 = scmp.lt.u32.totalorder %s994_s19, %s1257_s0 }
  0x17   :  { %p1000_p10 = pnand %p998_p9, %p995_p8 }
  0x19   :  { %1003 = shalt.err (!%p1000_p10)
}
  0x1a   :  { %s1004_s24 = scalar_lea.vmem %s1090_s27, 128  ;;  %s1008_s1 = scalar_lea.vmem %s1090_s27, 2048 }
  0x1b   :  { %p1005_p11 = scmp.ne.s32.totalorder %s1090_s27, %s1004_s24  ;;  %p1009_p12 = scmp.lt.s32.totalorder %s1090_s27, %s1090_s27 }
  0x1c   :  { %p1010_p13 = scmp.lt.s32.totalorder %s1008_s1, %s1004_s24 }
  0x1e   :  { %p1011_p0 = por %p1010_p13, %p1009_p12 }
  0x20   :  { %p1012_p1 = pnand %p1011_p0, %p1005_p11 }
  0x22   :  { %1015 = shalt.err (!%p1012_p1)
}
  0x23   :  { %26 = dma.hbm_to_vmem [thread:$0]  %s1257_s0, 128, %s1090_s27, [#allocation4], %s1044_s13, %s1044_s13, %s1045_s14  }
  0x24   :  { %s1046_s28 = smov [#allocation7]   ;;  %s1016_s9 = scalar_lea.hbm %s1260_s3, 512 }
  0x25   :  { %s46_s29 = sshll.u32 %s1046_s28, 4  ;;  %p1017_p2 = scmp.ne.s32.totalorder %s1260_s3, %s1016_s9  ;;  %s47_s29 = int_to_ptr.vmem [resolvable:$true] %s46_s29 }
  0x26   :  { %p1020_p3 = scmp.lt.u32.totalorder %s1016_s9, %s1260_s3 }
  0x28   :  { %p1022_p4 = pnand %p1020_p3, %p1017_p2 }
  0x2a   :  { %1025 = shalt.err (!%p1022_p4)
}
  0x2b   :  { %s1026_s16 = scalar_lea.vmem %s47_s29, 512  ;;  %p1031_p6 = scmp.lt.s32.totalorder %s47_s29, %s47_s29 }
  0x2c   :  { %p1027_p5 = scmp.ne.s32.totalorder %s47_s29, %s1026_s16  ;;  %p1032_p7 = scmp.lt.s32.totalorder %s1026_s16, %s1026_s16 }
  0x2e   :  { %p1033_p8 = por %p1032_p7, %p1031_p6 }
  0x30   :  { %p1034_p9 = pnand %p1033_p8, %p1027_p5 }
  0x32   :  { %1037 = shalt.err (!%p1034_p9)
}
  0x33   :  { %52 = dma.hbm_to_vmem [thread:$0]  %s1260_s3, 512, %s47_s29, [#allocation6], %s1044_s13, %s1044_s13, %s1045_s14  }
  0x34   :  { %1038 = dma.done.wait [#allocation4], 2048  }
  0x35   :  { %1039 = vsyncadd [#allocation4], 4294965248 }
  0x36   :  { %1040 = dma.done.wait [#allocation6], 768  }
  0x37   :  { %1041 = vsyncadd [#allocation6], 4294966528  ;;  %vm93_vm0 = vcmask 130048   ;;  %v84_v0 = vld [vmem:[#allocation5] sm:$0xff]  ;;  %v85_v1 = vld [vmem:[#allocation5 + $0x8] sm:$0xff]  ;;  %vm314_vm1 = vcmask 261120  }
  0x38   :  { %v68_v2 = vld [vmem:[#allocation3] sm:$0xff]  ;;  %v856_v3 = vpack.c.bf16 %v85_v1, %v84_v0  ;;  %v69_v4 = vld [vmem:[#allocation3 + $0x8] sm:$0xff]  ;;  %v70_v5 = vld [vmem:[#allocation3 + $0x10] sm:$0xff]  ;;  %vm1048_vm2 = vmmov 0  }
  0x39   :  { %765 = vmatprep.mubr.msk.f32.mxu1 %vm93_vm0, %v68_v2  ;;  %v303_v6 = vld [vmem:[#allocation7] sm:$0xff]  ;;  %v304_v7 = vld [vmem:[#allocation7 + $0x8] sm:$0xff]  ;;  %v305_v8 = vld [vmem:[#allocation7 + $0x10] sm:$0xff] }
  0x3a   :  { %857 = vmatprep.subr.bf16.mxu1 %v856_v3  ;;  %v860_v9 = vpack.c.bf16 %v304_v7, %v303_v6  ;;  %v306_v10 = vld [vmem:[#allocation7 + $0x18] sm:$0xff]  ;;  %v71_v11 = vld [vmem:[#allocation3 + $0x18] sm:$0xff]  ;;  %v72_v13 = vld [vmem:[#allocation3 + $0x20] sm:$0xff] }
  0x3b   :  { %859 = vmatpush3.bf16.msra.mxu1 %v856_v3  ;;  %v864_v12 = vpack.c.bf16 %v306_v10, %v305_v8  ;;  %v73_v14 = vld [vmem:[#allocation3 + $0x28] sm:$0xff]  ;;  %v74_v15 = vld [vmem:[#allocation3 + $0x30] sm:$0xff]  ;;  %v75_v16 = vld [vmem:[#allocation3 + $0x38] sm:$0xff]  ;;  %v1047_v10 = vmov 0.0|0.0  }
  0x3c   :  { %861 = vmatprep.subr.bf16.mxu1 %v860_v9  ;;  %v76_v17 = vld [vmem:[#allocation3 + $0x40] sm:$0xff]  ;;  %v77_v18 = vld [vmem:[#allocation3 + $0x48] sm:$0xff]  ;;  %v78_v19 = vld [vmem:[#allocation3 + $0x50] sm:$0xff]  ;;  %868 = vmatprep.subr.bf16.mxu0 %v1047_v10 }
  0x3d   :  { %v79_v20 = vld [vmem:[#allocation3 + $0x58] sm:$0xff]  ;;  %v80_v21 = vld [vmem:[#allocation3 + $0x60] sm:$0xff]  ;;  %v81_v22 = vld [vmem:[#allocation3 + $0x68] sm:$0xff] }
  0x3e   :  { %766 = vmatmul.mubr.msk.f32.vlgmr.msra.gmra.mrb[0].mxu1 %vm93_vm0, %v69_v4  ;;  %v82_v23 = vld [vmem:[#allocation3 + $0x70] sm:$0xff]  ;;  %v83_v24 = vld [vmem:[#allocation3 + $0x78] sm:$0xff]  ;;  %v1162_v25 = vld [vmem:[%s1259_s2] ss:$0 sm:$0xff] }
  0x3f   :  { %768 = vmatprep.mubr.msk.f32.mxu1 %vm93_vm0, %v70_v5  ;;  %863 = vmatpush3.bf16.msra.mxu1 %v860_v9  ;;  %vm1211_vm3 = vmpackc.low %vm314_vm1, %vm314_vm1 }
  0x40   :  { %865 = vmatprep.subr.bf16.mxu1 %v864_v12 }
  0x42   :  { %769 = vmatmul.mubr.msk.f32.gmra.mrb[2].mxu1 %vm93_vm0, %v71_v11  ;;  %v1049_v11 = vmov 0.0  }
  0x43   :  { %771 = vmatprep.mubr.msk.f32.mxu1 %vm93_vm0, %v72_v13  ;;  %867 = vmatpush3.bf16.msra.mxu1 %v864_v12  ;;  %v1200_v12 = vld [vmem:[%s1261_s4] ss:$0 sm:$0xff] }
  0x44   :  { %853 = vmatprep.mubr.msk.f32.mxu0 %vm1048_vm2, %v1049_v11 }
  0x46   :  { %772 = vmatmul.mubr.msk.f32.gmra.mrb[4].mxu1 %vm93_vm0, %v73_v14 }
  0x47   :  { %774 = vmatprep.mubr.msk.f32.mxu1 %vm93_vm0, %v74_v15 }
  0x4a   :  { %775 = vmatmul.mubr.msk.f32.gmra.mrb[6].mxu1 %vm93_vm0, %v75_v16 }
  0x4b   :  { %777 = vmatprep.mubr.msk.f32.mxu1 %vm93_vm0, %v76_v17 }
  0x4e   :  { %778 = vmatmul.mubr.msk.f32.gmra.mrb[8].mxu1 %vm93_vm0, %v77_v18 }
  0x4f   :  { %780 = vmatprep.mubr.msk.f32.mxu1 %vm93_vm0, %v78_v19 }
  0x52   :  { %781 = vmatmul.mubr.msk.f32.gmra.mrb[10].mxu1 %vm93_vm0, %v79_v20 }
  0x53   :  { %783 = vmatprep.mubr.msk.f32.mxu1 %vm93_vm0, %v80_v21 }
  0x56   :  { %784 = vmatmul.mubr.msk.f32.gmra.mrb[12].mxu1 %vm93_vm0, %v81_v22 }
  0x57   :  { %786 = vmatprep.mubr.msk.f32.mxu1 %vm93_vm0, %v82_v23 }
  0x5a   :  { %787 = vmatmul.mubr.msk.f32.gmra.mrb[14].mxu1 %vm93_vm0, %v83_v24 }
 0x111   :  { %v767_v26 = vpop.f32.mrb[0].mxu1 }
 0x112   :  { %v214_v27 = vadd.f32 %v767_v26, %v1162_v25  ;;  %v208_v28 = vpop.f32.mrb[1].mxu1 }
 0x113   :  { %v209_v29 = vadd.f32 %v1162_v25, %v208_v28 }
 0x115   :  { %908 = vtanh.f32 %v209_v29  ;;  %v770_v30 = vpop.f32.mrb[2].mxu1 }
 0x116   :  { %910 = vtanh.f32 %v214_v27  ;;  %v224_v31 = vadd.f32 %v770_v30, %v1162_v25  ;;  %v218_v32 = vpop.f32.mrb[3].mxu1 }
 0x117   :  { %v219_v33 = vadd.f32 %v1162_v25, %v218_v32 }
 0x118   :  { %912 = vtanh.f32 %v224_v31 }
 0x119   :  { %914 = vtanh.f32 %v219_v33  ;;  %v773_v34 = vpop.f32.mrb[4].mxu1 }
 0x11a   :  { %v234_v35 = vadd.f32 %v773_v34, %v1162_v25  ;;  %v228_v36 = vpop.f32.mrb[5].mxu1 }
 0x11b   :  { %v229_v37 = vadd.f32 %v1162_v25, %v228_v36 }
 0x11c   :  { %916 = vtanh.f32 %v234_v35 }
 0x11d   :  { %918 = vtanh.f32 %v229_v37  ;;  %v776_v38 = vpop.f32.mrb[6].mxu1 }
 0x11e   :  { %v244_v39 = vadd.f32 %v776_v38, %v1162_v25  ;;  %v238_v40 = vpop.f32.mrb[7].mxu1 }
 0x11f   :  { %v909_v41 = vpop.eup %908  ;;  %v239_v42 = vadd.f32 %v1162_v25, %v238_v40 }
 0x120   :  { %v911_v43 = vpop.eup %910  ;;  %797 = vmatprep.mubr.msk.f32.mxu1 %vm314_vm1, %v909_v41  ;;  %920 = vtanh.f32 %v244_v39 }
 0x121   :  { %798 = vmatmul.mubr.msk.f32.vlgmr.msra.gmra.mrb[16].mxu1 %vm314_vm1, %v911_v43  ;;  %922 = vtanh.f32 %v239_v42  ;;  %v779_v44 = vpop.f32.mrb[8].mxu1 }
 0x122   :  { %v913_v45 = vpop.eup %912  ;;  %v254_v46 = vadd.f32 %v779_v44, %v1162_v25  ;;  %v248_v47 = vpop.f32.mrb[9].mxu1 }
 0x123   :  { %v915_v48 = vpop.eup %914  ;;  %v249_v49 = vadd.f32 %v1162_v25, %v248_v47 }
 0x124   :  { %800 = vmatprep.mubr.msk.f32.mxu1 %vm314_vm1, %v915_v48  ;;  %924 = vtanh.f32 %v254_v46 }
 0x125   :  { %801 = vmatmul.mubr.msk.f32.gmra.mrb[18].mxu1 %vm314_vm1, %v913_v45  ;;  %926 = vtanh.f32 %v249_v49  ;;  %v782_v50 = vpop.f32.mrb[10].mxu1 }
 0x126   :  { %v917_v51 = vpop.eup %916  ;;  %v264_v52 = vadd.f32 %v782_v50, %v1162_v25  ;;  %v258_v53 = vpop.f32.mrb[11].mxu1 }
 0x127   :  { %v919_v54 = vpop.eup %918  ;;  %v259_v55 = vadd.f32 %v1162_v25, %v258_v53 }
 0x128   :  { %803 = vmatprep.mubr.msk.f32.mxu1 %vm314_vm1, %v919_v54  ;;  %928 = vtanh.f32 %v264_v52 }
 0x129   :  { %804 = vmatmul.mubr.msk.f32.gmra.mrb[20].mxu1 %vm314_vm1, %v917_v51  ;;  %930 = vtanh.f32 %v259_v55  ;;  %v785_v56 = vpop.f32.mrb[12].mxu1 }
 0x12a   :  { %v921_v57 = vpop.eup %920  ;;  %v274_v58 = vadd.f32 %v785_v56, %v1162_v25  ;;  %v268_v59 = vpop.f32.mrb[13].mxu1 }
 0x12b   :  { %v923_v60 = vpop.eup %922  ;;  %v269_v61 = vadd.f32 %v1162_v25, %v268_v59 }
 0x12c   :  { %806 = vmatprep.mubr.msk.f32.mxu1 %vm314_vm1, %v923_v60  ;;  %932 = vtanh.f32 %v274_v58 }
 0x12d   :  { %807 = vmatmul.mubr.msk.f32.gmra.mrb[22].mxu1 %vm314_vm1, %v921_v57  ;;  %934 = vtanh.f32 %v269_v61  ;;  %v788_v62 = vpop.f32.mrb[14].mxu1 }
 0x12e   :  { %v925_v63 = vpop.eup %924  ;;  %v284_v0 = vadd.f32 %v788_v62, %v1162_v25  ;;  %v278_v1 = vpop.f32.mrb[15].mxu1 }
 0x12f   :  { %v927_v2 = vpop.eup %926  ;;  %v279_v3 = vadd.f32 %v1162_v25, %v278_v1 }
 0x130   :  { %809 = vmatprep.mubr.msk.f32.mxu1 %vm314_vm1, %v927_v2  ;;  %936 = vtanh.f32 %v284_v0 }
 0x131   :  { %810 = vmatmul.mubr.msk.f32.gmra.mrb[24].mxu1 %vm314_vm1, %v925_v63  ;;  %938 = vtanh.f32 %v279_v3 }
 0x132   :  { %v929_v4 = vpop.eup %928 }
 0x133   :  { %v931_v5 = vpop.eup %930 }
 0x134   :  { %812 = vmatprep.mubr.msk.f32.mxu1 %vm314_vm1, %v931_v5 }
 0x135   :  { %813 = vmatmul.mubr.msk.f32.gmra.mrb[26].mxu1 %vm314_vm1, %v929_v4 }
 0x136   :  { %v933_v6 = vpop.eup %932 }
 0x137   :  { %v935_v7 = vpop.eup %934 }
 0x138   :  { %815 = vmatprep.mubr.msk.f32.mxu1 %vm314_vm1, %v935_v7  ;;  %v526_v7 = vstv %s1263_s6 }
 0x139   :  { %816 = vmatmul.mubr.msk.f32.gmra.mrb[28].mxu1 %vm314_vm1, %v933_v6  ;;  %v524_v6 = vld [vmem:[%s1262_s5] sm:$0x1] }
 0x13a   :  { %v937_v8 = vpop.eup %936 }
 0x13b   :  { %v939_v9 = vpop.eup %938 }
 0x13c   :  { %818 = vmatprep.mubr.msk.f32.mxu1 %vm314_vm1, %v939_v9 }
 0x13d   :  { %819 = vmatmul.mubr.msk.f32.gmra.mrb[30].mxu1 %vm314_vm1, %v937_v8 }
 0x1f4   :  { %v799_v13 = vpop.f32.mrb[16].mxu1 }
 0x1f5   :  { %v435_v14 = vadd.f32 %v799_v13, %v1200_v12  ;;  %v429_v15 = vpop.f32.mrb[17].mxu1 }
 0x1f6   :  { %v430_v16 = vadd.f32 %v1200_v12, %v429_v15 }
 0x1f7   :  { %940 = vtanh.f32 %v435_v14 }
 0x1f8   :  { %942 = vtanh.f32 %v430_v16  ;;  %v802_v17 = vpop.f32.mrb[18].mxu1 }
 0x1f9   :  { %v445_v18 = vadd.f32 %v802_v17, %v1200_v12  ;;  %v439_v19 = vpop.f32.mrb[19].mxu1 }
 0x1fa   :  { %v440_v20 = vadd.f32 %v1200_v12, %v439_v19 }
 0x1fb   :  { %944 = vtanh.f32 %v445_v18 }
 0x1fc   :  { %946 = vtanh.f32 %v440_v20  ;;  %v805_v21 = vpop.f32.mrb[20].mxu1 }
 0x1fd   :  { %v455_v22 = vadd.f32 %v805_v21, %v1200_v12  ;;  %v449_v23 = vpop.f32.mrb[21].mxu1 }
 0x1fe   :  { %v450_v24 = vadd.f32 %v1200_v12, %v449_v23 }
 0x1ff   :  { %948 = vtanh.f32 %v455_v22 }
 0x200   :  { %950 = vtanh.f32 %v450_v24  ;;  %v808_v25 = vpop.f32.mrb[22].mxu1 }
 0x201   :  { %v941_v26 = vpop.eup %940  ;;  %v465_v27 = vadd.f32 %v808_v25, %v1200_v12  ;;  %v459_v28 = vpop.f32.mrb[23].mxu1 }
 0x202   :  { %v943_v29 = vpop.eup %942  ;;  %v460_v31 = vadd.f32 %v1200_v12, %v459_v28 }
 0x203   :  { %v869_v32 = vpack.c.bf16 %v941_v26, %v943_v29  ;;  %952 = vtanh.f32 %v465_v27 }
 0x204   :  { %954 = vtanh.f32 %v460_v31  ;;  %v811_v33 = vpop.f32.mrb[24].mxu1 }
 0x205   :  { %v945_v34 = vpop.eup %944  ;;  %871 = vmatpush3.bf16.xpose.msk.msra.mxu0 %vm1211_vm3, %v869_v32  ;;  %v475_v35 = vadd.f32 %v811_v33, %v1200_v12  ;;  %v469_v36 = vpop.f32.mrb[25].mxu1 }
 0x206   :  { %v947_v37 = vpop.eup %946  ;;  %872 = vmatprep.subr.bf16.mxu0 %v1047_v10  ;;  %v470_v38 = vadd.f32 %v1200_v12, %v469_v36 }
 0x207   :  { %v873_v39 = vpack.c.bf16 %v945_v34, %v947_v37  ;;  %956 = vtanh.f32 %v475_v35 }
 0x208   :  { %958 = vtanh.f32 %v470_v38  ;;  %v814_v40 = vpop.f32.mrb[26].mxu1 }
 0x209   :  { %v949_v41 = vpop.eup %948  ;;  %v485_v42 = vadd.f32 %v814_v40, %v1200_v12  ;;  %v479_v43 = vpop.f32.mrb[27].mxu1 }
 0x20a   :  { %v951_v44 = vpop.eup %950  ;;  %v480_v45 = vadd.f32 %v1200_v12, %v479_v43 }
 0x20b   :  { %v877_v46 = vpack.c.bf16 %v949_v41, %v951_v44  ;;  %960 = vtanh.f32 %v485_v42 }
 0x20c   :  { %962 = vtanh.f32 %v480_v45  ;;  %v817_v47 = vpop.f32.mrb[28].mxu1 }
 0x20d   :  { %v953_v48 = vpop.eup %952  ;;  %875 = vmatpush3.bf16.xpose.msk.msra.mxu0 %vm1211_vm3, %v873_v39  ;;  %v495_v49 = vadd.f32 %v817_v47, %v1200_v12  ;;  %v489_v50 = vpop.f32.mrb[29].mxu1 }
 0x20e   :  { %v955_v51 = vpop.eup %954  ;;  %876 = vmatprep.subr.bf16.mxu0 %v1047_v10  ;;  %v490_v52 = vadd.f32 %v1200_v12, %v489_v50 }
 0x20f   :  { %v881_v53 = vpack.c.bf16 %v953_v48, %v955_v51  ;;  %964 = vtanh.f32 %v495_v49 }
 0x210   :  { %966 = vtanh.f32 %v490_v52  ;;  %v820_v54 = vpop.f32.mrb[30].mxu1 }
 0x211   :  { %v957_v55 = vpop.eup %956  ;;  %v505_v56 = vadd.f32 %v820_v54, %v1200_v12  ;;  %v499_v57 = vpop.f32.mrb[31].mxu1 }
 0x212   :  { %v959_v58 = vpop.eup %958  ;;  %v500_v59 = vadd.f32 %v1200_v12, %v499_v57 }
 0x213   :  { %v885_v60 = vpack.c.bf16 %v957_v55, %v959_v58  ;;  %968 = vtanh.f32 %v505_v56 }
 0x214   :  { %970 = vtanh.f32 %v500_v59 }
 0x215   :  { %v961_v61 = vpop.eup %960  ;;  %879 = vmatpush3.bf16.xpose.msk.msra.mxu0 %vm1211_vm3, %v877_v46 }
 0x216   :  { %v963_v62 = vpop.eup %962  ;;  %880 = vmatprep.subr.bf16.mxu0 %v1047_v10 }
 0x217   :  { %v889_v63 = vpack.c.bf16 %v961_v61, %v963_v62 }
 0x219   :  { %v965_v0 = vpop.eup %964 }
 0x21a   :  { %v967_v1 = vpop.eup %966 }
 0x21b   :  { %v893_v2 = vpack.c.bf16 %v965_v0, %v967_v1 }
 0x21d   :  { %v969_v3 = vpop.eup %968  ;;  %883 = vmatpush3.bf16.xpose.msk.msra.mxu0 %vm1211_vm3, %v881_v53 }
 0x21e   :  { %v971_v4 = vpop.eup %970  ;;  %884 = vmatprep.subr.bf16.mxu0 %v1047_v10 }
 0x21f   :  { %v897_v5 = vpack.c.bf16 %v969_v3, %v971_v4 }
 0x225   :  { %887 = vmatpush3.bf16.xpose.msk.msra.mxu0 %vm1211_vm3, %v885_v60 }
 0x226   :  { %888 = vmatprep.subr.bf16.mxu0 %v1047_v10 }
 0x22d   :  { %891 = vmatpush3.bf16.xpose.msk.msra.mxu0 %vm1211_vm3, %v889_v63 }
 0x22e   :  { %892 = vmatprep.subr.bf16.mxu0 %v1047_v10 }
 0x235   :  { %895 = vmatpush3.bf16.xpose.msk.msra.mxu0 %vm1211_vm3, %v893_v2 }
 0x236   :  { %896 = vmatprep.subr.bf16.mxu0 %v1047_v10 }
 0x23d   :  { %899 = vmatpush3.bf16.xpose.msk.msra.mxu0 %vm1211_vm3, %v897_v5 }
 0x244   :  { %854 = vmatmul.mubr.msk.f32.vlgmr.msra.gmra.mrb[0].mxu0 %vm314_vm1, %v524_v6 }
 0x317   :  { %v644_v8 = vpop.f32.mrb[0].mxu0 }
 0x318   :  { %v645_v9 = vadd.f32 %v644_v8, %v526_v7  ;;  %v855_v11 = vpop.f32.mrb[1].mxu0 }
 0x31a   :  { %648 = vst [vmem:[%s1264_s7] sm:$0x1] %v645_v9 }
 0x31b   :  { %653 = vsyncpa [#allocation4], 1 }
 0x31c   :  { %654 = vsyncpa [#allocation6], 1 }

</bundles_post_ra>
